<compile_context>
chip_gen: v6e
topology: v6e:2x2x1
jax: 0.10.0
libtpu: 0.0.40
codegen_flags: <defaults>
</compile_context>

<pallas_src>
import jax
import jax.numpy as jnp
from jax.experimental import pallas as pl
from jax.experimental.pallas import tpu as pltpu


def _linear_sub_kernel(x_ref, w_ref, b_ref, other_ref, o_ref):
    # x_ref:     (M/2, 128)  lane-dense packed activations (two logical rows
    #                        of 64 features per physical row)
    # w_ref:     (128, 128)  block-diagonal [[W^T, 0], [0, W^T]]
    # b_ref:     (1, 128)    bias tiled twice along lanes
    # other_ref: (1, 128)    `other` tiled twice along lanes
    # o_ref:     (M/2, 128)
    y = jnp.dot(x_ref[...], w_ref[...], preferred_element_type=jnp.float32)
    o_ref[...] = (y + b_ref[...] - other_ref[...]).astype(o_ref.dtype)


@jax.jit
def linear_sub(x, weight, bias, other):
    """x: (N, C, H, W=64); weight: (64, 64) [out, in]; bias, other: (64,)."""
    N, C, H, W = x.shape
    out_f, in_f = weight.shape
    assert W == in_f
    M = N * C * H                       # 192
    assert M % 2 == 0
    Mp = M // 2                         # 96 rows, multiple of 8 (f32 sublane)

    # Lane-dense packing: consecutive 64-wide rows -> one 128-wide row.
    x_packed = x.reshape(Mp, 2 * W)                       # (96, 128)

    # Block-diagonal transposed weight so
    #   [x_{2i} | x_{2i+1}] @ W_bd = [x_{2i} @ W^T | x_{2i+1} @ W^T].
    w_t = weight.T                                        # (in_f, out_f)
    z = jnp.zeros_like(w_t)
    w_bd = jnp.block([[w_t, z], [z, w_t]])                # (128, 128)

    b2 = jnp.tile(bias.reshape(1, out_f), (1, 2))         # (1, 128)
    o2 = jnp.tile(other.reshape(1, out_f), (1, 2))        # (1, 128)

    flops = 2 * Mp * (2 * W) * (2 * out_f)                # MXU work actually issued
    bytes_accessed = 4 * (Mp * 2 * W          # x_packed
                          + (2 * W) * (2 * out_f)  # w_bd
                          + 2 * (2 * out_f)        # b2 + o2
                          + Mp * 2 * out_f)        # output

    out_packed = pl.pallas_call(
        _linear_sub_kernel,
        out_shape=jax.ShapeDtypeStruct((Mp, 2 * out_f), x.dtype),
        in_specs=[
            pl.BlockSpec(memory_space=pltpu.MemorySpace.VMEM),
            pl.BlockSpec(memory_space=pltpu.MemorySpace.VMEM),
            pl.BlockSpec(memory_space=pltpu.MemorySpace.VMEM),
            pl.BlockSpec(memory_space=pltpu.MemorySpace.VMEM),
        ],
        out_specs=pl.BlockSpec(memory_space=pltpu.MemorySpace.VMEM),
        cost_estimate=pl.CostEstimate(
            flops=flops, transcendentals=0, bytes_accessed=bytes_accessed),
        compiler_params=pltpu.CompilerParams(
            allow_input_fusion=[True, True, True, True]),
    )(x_packed, w_bd, b2, o2)

    # (96, 128) flat order == (192, 64) flat order == (N, C, H, out_f).
    return out_packed.reshape(N, C, H, out_f)


if __name__ == "__main__":
    key = jax.random.PRNGKey(0)
    kx, kw, kb, ko = jax.random.split(key, 4)

    # Shapes implied by the module: x1 = randn(1, 3, 64, 64), Linear(64, 64)
    N, C, H, W = 1, 3, 64, 64
    x = jax.random.normal(kx, (N, C, H, W), dtype=jnp.float32)

    # Deterministic parameter init (PyTorch Linear shapes: weight (64,64), bias (64,))
    bound = 1.0 / (W ** 0.5)
    weight = jax.random.uniform(kw, (64, 64), minval=-bound, maxval=bound,
                                dtype=jnp.float32)
    bias = jax.random.uniform(kb, (64,), minval=-bound, maxval=bound,
                              dtype=jnp.float32)
    other = jax.random.normal(ko, (64,), dtype=jnp.float32)

    out = linear_sub(x, weight, bias, other)
    out = jax.block_until_ready(out)

    # Pure-JAX reference check
    ref = (x.reshape(-1, W) @ weight.T + bias - other).reshape(N, C, H, 64)
    assert out.shape == (N, C, H, 64)
    assert jnp.allclose(out, ref, atol=1e-5, rtol=1e-5)

    print("KERNEL_OK")
</pallas_src>

<mosaic_0001>
module attributes {stable_mosaic.version = 11 : i64} {
  func.func @_linear_sub_kernel(%arg0: memref<96x128xf32, #tpu.memory_space<vmem>>, %arg1: memref<128x128xf32, #tpu.memory_space<vmem>>, %arg2: memref<1x128xf32, #tpu.memory_space<vmem>>, %arg3: memref<1x128xf32, #tpu.memory_space<vmem>>, %arg4: memref<96x128xf32, #tpu.memory_space<vmem>>) attributes {dimension_semantics = [], scalar_prefetch = 0 : i64, scratch_operands = 0 : i64, tpu.core_type = #tpu.core_type<tc>} {
    %c0 = arith.constant 0 : index
    %c0_0 = arith.constant 0 : index
    %0 = vector.load %arg0[%c0, %c0_0] : memref<96x128xf32, #tpu.memory_space<vmem>>, vector<96x128xf32>
    %c0_1 = arith.constant 0 : index
    %c0_2 = arith.constant 0 : index
    %1 = vector.load %arg1[%c0_1, %c0_2] : memref<128x128xf32, #tpu.memory_space<vmem>>, vector<128x128xf32>
    %cst = arith.constant dense<0.000000e+00> : vector<96x128xf32>
    %2 = tpu.matmul %0, %1, %cst {dimension_numbers = #tpu.dot_dimension_numbers<[1], [0], [0], [1], [0, 0, 1, 1], [], []>} : vector<96x128xf32>, vector<128x128xf32>, vector<96x128xf32> -> vector<96x128xf32>
    %c0_3 = arith.constant 0 : index
    %c0_4 = arith.constant 0 : index
    %3 = vector.load %arg2[%c0_3, %c0_4] : memref<1x128xf32, #tpu.memory_space<vmem>>, vector<1x128xf32>
    %4 = vector.broadcast %3 : vector<1x128xf32> to vector<96x128xf32>
    %5 = arith.addf %2, %4 : vector<96x128xf32>
    %c0_5 = arith.constant 0 : index
    %c0_6 = arith.constant 0 : index
    %6 = vector.load %arg3[%c0_5, %c0_6] : memref<1x128xf32, #tpu.memory_space<vmem>>, vector<1x128xf32>
    %7 = vector.broadcast %6 : vector<1x128xf32> to vector<96x128xf32>
    %8 = arith.subf %5, %7 : vector<96x128xf32>
    %c0_7 = arith.constant 0 : index
    %c0_8 = arith.constant 0 : index
    %9 = vector.load %arg4[%c0_7, %c0_8] : memref<96x128xf32, #tpu.memory_space<vmem>>, vector<96x128xf32>
    tpu.vector_store %arg4[%c0_7, %c0_8], %8 {strides = array<i32>} : memref<96x128xf32, #tpu.memory_space<vmem>>, vector<96x128xf32>,
    return
  }
}

</mosaic_0001>

<bundles_post_ra>
// kernel: linear_sub.2
= control target key start
LH: loop header
LB: loop body
LE: loop exit
PB: predicated region body
PF: predicated region fallthrough
CT: control target
= control target key end

     0   :  { %v62_v3 = vlaneseq  ;;  %s1201_s16 = smov 64   ;;  %s1584_s0 = inlined_call_operand.vmem [shape: f32[96,128], index: 0, kind: input, shape index: {}]   ;;  %s1585_s1 = inlined_call_operand.vmem [shape: f32[1,128], index: 1, kind: input, shape index: {}]   ;;  %s1586_s2 = inlined_call_operand.vmem [shape: f32[1,128], index: 2, kind: input, shape index: {}]   ;;  %s1587_s3 = inlined_call_operand.vmem [shape: f32[64,64], index: 3, kind: input, shape index: {}]   ;;  %s1588_s4 = inlined_call_operand.<no memory space> [shape: f32[], index: 4, kind: input, shape index: {}]   ;;  %s1589_s5 = inlined_call_operand.<no memory space> [shape: f32[], index: 5, kind: input, shape index: {}]   ;;  %s1590_s6 = inlined_call_operand.<no memory space> [shape: s32[], index: 6, kind: input, shape index: {}]   ;;  %s1591_s7 = inlined_call_operand.vmem [shape: f32[96,128], index: 7, kind: output, shape index: {}]  }
   0x1   :  { %v1245_v0 = vstv %s1588_s4  ;;  %v1250_v1 = vstv %s1589_s5  ;;  %v1255_v2 = vstv %s1590_s6  ;;  %v1087_v5 = vld [vmem:[%s1587_s3 + $0x38] sm:$0xff] }
   0x2   :  { %v1257_v4 = vand.u32 127, %v62_v3  ;;  %v1086_v7 = vld [vmem:[%s1587_s3 + $0x30] sm:$0xff]  ;;  %v1085_v8 = vld [vmem:[%s1587_s3 + $0x28] sm:$0xff]  ;;  %v1084_v9 = vld [vmem:[%s1587_s3 + $0x20] sm:$0xff]  ;;  %v1319_v26 = vshrl.u32 %v62_v3, 7 }
   0x3   :  { %v1083_v16 = vld [vmem:[%s1587_s3 + $0x18] sm:$0xff]  ;;  %v1082_v17 = vld [vmem:[%s1587_s3 + $0x10] sm:$0xff]  ;;  %v1081_v22 = vld [vmem:[%s1587_s3 + $0x8] sm:$0xff] }
   0x4   :  { %v440_v6 = vadd.s32 128, %v1257_v4  ;;  %vm65_vm0 = vcmp.lt.s32.totalorder %v1257_v4, 64  ;;  %v1080_v23 = vld [vmem:[%s1587_s3] sm:$0xff]  ;;  %v401_v30 = vadd.s32 56, %v1319_v26  ;;  %v357_v32 = vadd.s32 48, %v1319_v26 }
   0x5   :  { %v397_v29 = vsel %vm65_vm0, %v1087_v5, %v1245_v0  ;;  %v353_v31 = vsel %vm65_vm0, %v1086_v7, %v1245_v0  ;;  %v305_v33 = vsel %vm65_vm0, %v1085_v8, %v1245_v0  ;;  %v309_v36 = vadd.s32 40, %v1319_v26 }
   0x6   :  { %vm441_vm1 = vcmp.lt.s32.totalorder %v440_v6, 192  ;;  %v261_v37 = vadd.s32 32, %v1319_v26  ;;  %vm404_vm2 = vcmp.lt.s32.totalorder %v401_v30, %v1255_v2  ;;  %vm417_vm3 = vcmp.ge.s32.totalorder %v401_v30, %v1255_v2 }
   0x7   :  { %v799_v10 = vsel %vm441_vm1, %v1087_v5, %v1245_v0  ;;  %v748_v11 = vsel %vm441_vm1, %v1086_v7, %v1245_v0  ;;  %v697_v12 = vsel %vm441_vm1, %v1085_v8, %v1245_v0  ;;  %v646_v13 = vsel %vm441_vm1, %v1084_v9, %v1245_v0 }
   0x8   :  { %v803_v14 = vsel %vm65_vm0, %v799_v10, %v1245_v0  ;;  %v701_v15 = vsel %vm65_vm0, %v697_v12, %v1245_v0  ;;  %v752_v18 = vsel %vm65_vm0, %v748_v11, %v1245_v0  ;;  %v650_v19 = vsel %vm65_vm0, %v646_v13, %v1245_v0  ;;  %v846_v10 = vld [vmem:[%s1584_s0 + $0x30] sm:$0xff] }
   0x9   :  { %804 = vrot.lane.b32.xlu0 %v803_v14, %s1201_s16  ;;  %702 = vrot.lane.b32.xlu1 %v701_v15, %s1201_s16  ;;  %v595_v20 = vsel %vm441_vm1, %v1083_v16, %v1245_v0  ;;  %v544_v21 = vsel %vm441_vm1, %v1082_v17, %v1245_v0  ;;  %v493_v27 = vsel %vm441_vm1, %v1081_v22, %v1245_v0  ;;  %v213_v44 = vadd.s32 24, %v1319_v26 }
   0xa   :  { %v599_v24 = vsel %vm65_vm0, %v595_v20, %v1245_v0  ;;  %v548_v25 = vsel %vm65_vm0, %v544_v21, %v1245_v0  ;;  %v442_v28 = vsel %vm441_vm1, %v1080_v23, %v1245_v0  ;;  %v497_v34 = vsel %vm65_vm0, %v493_v27, %v1245_v0  ;;  %1159 = vmatprep.mubr.f32.mxu1 %v846_v10 }
   0xb   :  { %v446_v35 = vsel %vm65_vm0, %v442_v28, %v1245_v0  ;;  %vm360_vm4 = vcmp.lt.s32.totalorder %v357_v32, %v1255_v2  ;;  %vm373_vm5 = vcmp.ge.s32.totalorder %v357_v32, %v1255_v2  ;;  %v409_v38 = vsel %vm404_vm2, %v397_v29, %v1250_v1 }
   0xc   :  { %v422_v39 = vsel %vm417_vm3, %v1245_v0, %v1250_v1  ;;  %v365_v40 = vsel %vm360_vm4, %v353_v31, %v1250_v1  ;;  %v378_v41 = vsel %vm373_vm5, %v1245_v0, %v1250_v1  ;;  %vm312_vm6 = vcmp.lt.s32.totalorder %v309_v36, %v1255_v2 }
   0xd   :  { %753 = vrot.lane.b32.xlu0 %v752_v18, %s1201_s16  ;;  %651 = vrot.lane.b32.xlu1 %v650_v19, %s1201_s16  ;;  %v1358_v42 = vmax.f32 %v409_v38, %v422_v39  ;;  %v1360_v43 = vmax.f32 %v365_v40, %v378_v41  ;;  %v317_v45 = vsel %vm312_vm6, %v305_v33, %v1250_v1  ;;  %v165_v57 = vadd.s32 16, %v1319_v26 }
   0xe   :  { %vm325_vm7 = vcmp.ge.s32.totalorder %v309_v36, %v1255_v2  ;;  %v257_v46 = vsel %vm65_vm0, %v1084_v9, %v1245_v0  ;;  %vm264_vm8 = vcmp.lt.s32.totalorder %v261_v37, %v1255_v2  ;;  %vm277_vm9 = vcmp.ge.s32.totalorder %v261_v37, %v1255_v2  ;;  %v840_v9 = vld [vmem:[%s1584_s0] sm:$0xff] }
   0xf   :  { %v330_v47 = vsel %vm325_vm7, %v1245_v0, %v1250_v1  ;;  %v269_v48 = vsel %vm264_vm8, %v257_v46, %v1250_v1  ;;  %v209_v49 = vsel %vm65_vm0, %v1083_v16, %v1245_v0  ;;  %v282_v51 = vsel %vm277_vm9, %v1245_v0, %v1250_v1  ;;  %1150 = vmatprep.mubr.f32.mxu0 %v840_v9 }
  0x10   :  { %v1377_v50 = vmax.f32 %v317_v45, %v330_v47  ;;  %vm216_vm10 = vcmp.lt.s32.totalorder %v213_v44, %v1255_v2  ;;  %vm229_vm11 = vcmp.ge.s32.totalorder %v213_v44, %v1255_v2  ;;  %v1383_v52 = vmax.f32 %v269_v48, %v282_v51 }
  0x11   :  { %600 = vrot.lane.b32.xlu0 %v599_v24, %s1201_s16  ;;  %549 = vrot.lane.b32.xlu1 %v548_v25, %s1201_s16  ;;  %v221_v53 = vsel %vm216_vm10, %v209_v49, %v1250_v1  ;;  %v234_v54 = vsel %vm229_vm11, %v1245_v0, %v1250_v1  ;;  %v161_v55 = vsel %vm65_vm0, %v1082_v17, %v1245_v0  ;;  %v117_v59 = vadd.s32 8, %v1319_v26 }
  0x12   :  { %v1391_v56 = vmax.f32 %v221_v53, %v234_v54  ;;  %v113_v58 = vsel %vm65_vm0, %v1081_v22, %v1245_v0  ;;  %v66_v60 = vsel %vm65_vm0, %v1080_v23, %v1245_v0  ;;  %vm73_vm12 = vcmp.lt.s32.totalorder %v1319_v26, %v1255_v2 }
  0x13   :  { %vm86_vm13 = vcmp.ge.s32.totalorder %v1319_v26, %v1255_v2  ;;  %vm168_vm14 = vcmp.lt.s32.totalorder %v165_v57, %v1255_v2  ;;  %vm181_vm15 = vcmp.ge.s32.totalorder %v165_v57, %v1255_v2  ;;  %vm120_vm1 = vcmp.lt.s32.totalorder %v117_v59, %v1255_v2  ;;  %v851_v57 = vld [vmem:[%s1584_s0 + $0x58] sm:$0xff] }
  0x14   :  { %vm133_vm2 = vcmp.ge.s32.totalorder %v117_v59, %v1255_v2  ;;  %v173_v61 = vsel %vm168_vm14, %v161_v55, %v1250_v1  ;;  %v186_v62 = vsel %vm181_vm15, %v1245_v0, %v1250_v1  ;;  %v125_v63 = vsel %vm120_vm1, %v113_v58, %v1250_v1  ;;  %v850_v55 = vld [vmem:[%s1584_s0 + $0x50] sm:$0xff]  ;;  %v1088_v58 = vld [vmem:[%s1585_s1] ss:$0 sm:$0xff] }
  0x15   :  { %498 = vrot.lane.b32.xlu0 %v497_v34, %s1201_s16  ;;  %447 = vrot.lane.b32.xlu1 %v446_v35, %s1201_s16  ;;  %v138_v3 = vsel %vm133_vm2, %v1245_v0, %v1250_v1  ;;  %v1415_v4 = vmax.f32 %v173_v61, %v186_v62  ;;  %v78_v6 = vsel %vm73_vm12, %v66_v60, %v1250_v1  ;;  %v809_v11 = vadd.s32 120, %v1319_v26  ;;  %v1089_v60 = vld [vmem:[%s1586_s2] ss:$0 sm:$0xff] }
  0x16   :  { %v1417_v5 = vmax.f32 %v125_v63, %v138_v3  ;;  %v91_v7 = vsel %vm86_vm13, %v1245_v0, %v1250_v1  ;;  %v758_v12 = vadd.s32 112, %v1319_v26  ;;  %v707_v13 = vadd.s32 104, %v1319_v26 }
  0x17   :  { %v1422_v8 = vmax.f32 %v78_v6, %v91_v7  ;;  %vm812_vm0 = vcmp.lt.s32.totalorder %v809_v11, %v1255_v2  ;;  %v656_v14 = vadd.s32 96, %v1319_v26  ;;  %vm825_vm3 = vcmp.ge.s32.totalorder %v809_v11, %v1255_v2 }
  0x18   :  { %v817_v15 = vsel %vm812_vm0, %v1245_v0, %v1250_v1  ;;  %vm761_vm4 = vcmp.lt.s32.totalorder %v758_v12, %v1255_v2  ;;  %vm710_vm5 = vcmp.lt.s32.totalorder %v707_v13, %v1255_v2  ;;  %v605_v18 = vadd.s32 88, %v1319_v26 }
  0x19   :  { %v554_v19 = vadd.s32 80, %v1319_v26  ;;  %vm659_vm6 = vcmp.lt.s32.totalorder %v656_v14, %v1255_v2  ;;  %vm774_vm7 = vcmp.ge.s32.totalorder %v758_v12, %v1255_v2  ;;  %vm723_vm8 = vcmp.ge.s32.totalorder %v707_v13, %v1255_v2 }
  0x1a   :  { %vm672_vm9 = vcmp.ge.s32.totalorder %v656_v14, %v1255_v2  ;;  %v766_v22 = vsel %vm761_vm4, %v1245_v0, %v1250_v1  ;;  %v715_v23 = vsel %vm710_vm5, %v1245_v0, %v1250_v1  ;;  %v664_v25 = vsel %vm659_vm6, %v1245_v0, %v1250_v1 }
  0x1b   :  { %vm608_vm10 = vcmp.lt.s32.totalorder %v605_v18, %v1255_v2  ;;  %vm557_vm11 = vcmp.lt.s32.totalorder %v554_v19, %v1255_v2  ;;  %v503_v28 = vadd.s32 72, %v1319_v26  ;;  %vm621_vm12 = vcmp.ge.s32.totalorder %v605_v18, %v1255_v2 }
  0x1c   :  { %vm570_vm13 = vcmp.ge.s32.totalorder %v554_v19, %v1255_v2  ;;  %v452_v33 = vadd.s32 64, %v1319_v26  ;;  %v613_v34 = vsel %vm608_vm10, %v1245_v0, %v1250_v1  ;;  %v562_v35 = vsel %vm557_vm11, %v1245_v0, %v1250_v1 }
  0x1d   :  { %vm506_vm14 = vcmp.lt.s32.totalorder %v503_v28, %v1255_v2  ;;  %vm519_vm15 = vcmp.ge.s32.totalorder %v503_v28, %v1255_v2 }
  0x1e   :  { %vm455_vm1 = vcmp.lt.s32.totalorder %v452_v33, %v1255_v2  ;;  %vm468_vm2 = vcmp.ge.s32.totalorder %v452_v33, %v1255_v2  ;;  %v511_v44 = vsel %vm506_vm14, %v1245_v0, %v1250_v1  ;;  %v842_v2 = vld [vmem:[%s1584_s0 + $0x10] sm:$0xff] }
  0x1f   :  { %v460_v49 = vsel %vm455_vm1, %v1245_v0, %v1250_v1  ;;  %v841_v0 = vld [vmem:[%s1584_s0 + $0x8] sm:$0xff] }
  0x7b   :  { %v805_v16 = vpop.permute.xlu0 %804  ;;  %v703_v17 = vpop.permute.xlu1 %702 }
  0x7c   :  { %v830_v20 = vsel %vm825_vm3, %v805_v16, %v1250_v1  ;;  %v728_v30 = vsel %vm723_vm8, %v703_v17, %v1250_v1 }
  0x7d   :  { %v834_v21 = vmax.f32 %v817_v15, %v830_v20  ;;  %v732_v36 = vmax.f32 %v715_v23, %v728_v30 }
  0x7f   :  { %1118 = vmatprep.subr.mxu0 %v834_v21  ;;  %1168 = vmatprep.subr.mxu1 %v834_v21  ;;  %v754_v24 = vpop.permute.xlu0 %753  ;;  %v652_v27 = vpop.permute.xlu1 %651 }
  0x80   :  { %v779_v29 = vsel %vm774_vm7, %v754_v24, %v1250_v1  ;;  %1119 = vmatpush3.msra.mxu0 %v834_v21  ;;  %1184 = vmatpush3.msra.mxu1 %v834_v21  ;;  %v677_v31 = vsel %vm672_vm9, %v652_v27, %v1250_v1 }
  0x81   :  { %v783_v32 = vmax.f32 %v766_v22, %v779_v29  ;;  %v681_v37 = vmax.f32 %v664_v25, %v677_v31 }
  0x83   :  { %1120 = vmatprep.subr.mxu0 %v783_v32  ;;  %1169 = vmatprep.subr.mxu1 %v783_v32  ;;  %v601_v38 = vpop.permute.xlu0 %600  ;;  %v550_v39 = vpop.permute.xlu1 %549 }
  0x84   :  { %1121 = vmatpush3.msra.mxu0 %v783_v32  ;;  %1185 = vmatpush3.msra.mxu1 %v783_v32  ;;  %v626_v40 = vsel %vm621_vm12, %v601_v38, %v1250_v1  ;;  %v575_v26 = vsel %vm570_vm13, %v550_v39, %v1250_v1 }
  0x85   :  { %1122 = vmatprep.subr.mxu0 %v732_v36  ;;  %1170 = vmatprep.subr.mxu1 %v732_v36  ;;  %v630_v41 = vmax.f32 %v613_v34, %v626_v40  ;;  %v579_v45 = vmax.f32 %v562_v35, %v575_v26 }
  0x86   :  { %1123 = vmatpush3.msra.mxu0 %v732_v36  ;;  %1186 = vmatpush3.msra.mxu1 %v732_v36 }
  0x87   :  { %1124 = vmatprep.subr.mxu0 %v681_v37  ;;  %1171 = vmatprep.subr.mxu1 %v681_v37  ;;  %v499_v46 = vpop.permute.xlu0 %498  ;;  %v448_v47 = vpop.permute.xlu1 %447 }
  0x88   :  { %1125 = vmatpush3.msra.mxu0 %v681_v37  ;;  %1187 = vmatpush3.msra.mxu1 %v681_v37  ;;  %v524_v48 = vsel %vm519_vm15, %v499_v46, %v1250_v1  ;;  %v473_v51 = vsel %vm468_vm2, %v448_v47, %v1250_v1  ;;  %v847_v1 = vld [vmem:[%s1584_s0 + $0x38] sm:$0xff] }
  0x89   :  { %1126 = vmatprep.subr.mxu0 %v630_v41  ;;  %1172 = vmatprep.subr.mxu1 %v630_v41  ;;  %v528_v53 = vmax.f32 %v511_v44, %v524_v48  ;;  %v477_v54 = vmax.f32 %v460_v49, %v473_v51 }
  0x8a   :  { %1127 = vmatpush3.msra.mxu0 %v630_v41  ;;  %1188 = vmatpush3.msra.mxu1 %v630_v41 }
  0x8b   :  { %1128 = vmatprep.subr.mxu0 %v579_v45  ;;  %1173 = vmatprep.subr.mxu1 %v579_v45 }
  0x8c   :  { %1129 = vmatpush3.msra.mxu0 %v579_v45  ;;  %1189 = vmatpush3.msra.mxu1 %v579_v45 }
  0x8d   :  { %1130 = vmatprep.subr.mxu0 %v528_v53  ;;  %1174 = vmatprep.subr.mxu1 %v528_v53 }
  0x8e   :  { %1131 = vmatpush3.msra.mxu0 %v528_v53  ;;  %1190 = vmatpush3.msra.mxu1 %v528_v53 }
  0x8f   :  { %1132 = vmatprep.subr.mxu0 %v477_v54  ;;  %1175 = vmatprep.subr.mxu1 %v477_v54 }
  0x90   :  { %1133 = vmatpush3.msra.mxu0 %v477_v54  ;;  %1191 = vmatpush3.msra.mxu1 %v477_v54 }
  0x91   :  { %1134 = vmatprep.subr.mxu0 %v1358_v42  ;;  %1176 = vmatprep.subr.mxu1 %v1358_v42 }
  0x92   :  { %1135 = vmatpush3.msra.mxu0 %v1358_v42  ;;  %1192 = vmatpush3.msra.mxu1 %v1358_v42  ;;  %v848_v42 = vld [vmem:[%s1584_s0 + $0x40] sm:$0xff] }
  0x93   :  { %1136 = vmatprep.subr.mxu0 %v1360_v43  ;;  %1177 = vmatprep.subr.mxu1 %v1360_v43 }
  0x94   :  { %1137 = vmatpush3.msra.mxu0 %v1360_v43  ;;  %1193 = vmatpush3.msra.mxu1 %v1360_v43  ;;  %v843_v43 = vld [vmem:[%s1584_s0 + $0x18] sm:$0xff] }
  0x95   :  { %1138 = vmatprep.subr.mxu0 %v1377_v50  ;;  %1178 = vmatprep.subr.mxu1 %v1377_v50 }
  0x96   :  { %1139 = vmatpush3.msra.mxu0 %v1377_v50  ;;  %1194 = vmatpush3.msra.mxu1 %v1377_v50  ;;  %v849_v50 = vld [vmem:[%s1584_s0 + $0x48] sm:$0xff] }
  0x97   :  { %1140 = vmatprep.subr.mxu0 %v1383_v52  ;;  %1179 = vmatprep.subr.mxu1 %v1383_v52 }
  0x98   :  { %1141 = vmatpush3.msra.mxu0 %v1383_v52  ;;  %1195 = vmatpush3.msra.mxu1 %v1383_v52  ;;  %v844_v52 = vld [vmem:[%s1584_s0 + $0x20] sm:$0xff] }
  0x99   :  { %1142 = vmatprep.subr.mxu0 %v1391_v56  ;;  %1180 = vmatprep.subr.mxu1 %v1391_v56 }
  0x9a   :  { %1143 = vmatpush3.msra.mxu0 %v1391_v56  ;;  %1196 = vmatpush3.msra.mxu1 %v1391_v56  ;;  %v845_v56 = vld [vmem:[%s1584_s0 + $0x28] sm:$0xff] }
  0x9b   :  { %1144 = vmatprep.subr.mxu0 %v1415_v4  ;;  %1181 = vmatprep.subr.mxu1 %v1415_v4 }
  0x9c   :  { %1145 = vmatpush3.msra.mxu0 %v1415_v4  ;;  %1197 = vmatpush3.msra.mxu1 %v1415_v4 }
  0x9d   :  { %1146 = vmatprep.subr.mxu0 %v1417_v5  ;;  %1182 = vmatprep.subr.mxu1 %v1417_v5 }
  0x9e   :  { %1147 = vmatpush3.msra.mxu0 %v1417_v5  ;;  %1198 = vmatpush3.msra.mxu1 %v1417_v5 }
  0x9f   :  { %1148 = vmatprep.subr.mxu0 %v1422_v8  ;;  %1183 = vmatprep.subr.mxu1 %v1422_v8 }
  0xa0   :  { %1149 = vmatpush3.msra.mxu0 %v1422_v8  ;;  %1199 = vmatpush3.msra.mxu1 %v1422_v8 }
  0xa1   :  { %1151 = vmatmul.mubr.f32.vlgmr.msra.gmra.mxu0 %v841_v0  ;;  %1160 = vmatmul.mubr.f32.vlgmr.msra.gmra.mxu1 %v847_v1 }
  0xa2   :  { %1153 = vmatprep.mubr.f32.mxu0 %v842_v2  ;;  %1162 = vmatprep.mubr.f32.mxu1 %v848_v42 }
  0xa5   :  { %1154 = vmatmul.mubr.f32.gmra.mxu0 %v843_v43  ;;  %1163 = vmatmul.mubr.f32.gmra.mxu1 %v849_v50 }
  0xa6   :  { %1156 = vmatprep.mubr.f32.mxu0 %v844_v52  ;;  %1165 = vmatprep.mubr.f32.mxu1 %v850_v55 }
  0xa9   :  { %1157 = vmatmul.mubr.f32.gmra.mxu0 %v845_v56  ;;  %1166 = vmatmul.mubr.f32.gmra.mxu1 %v851_v57 }
 0x161   :  { %v1152_v59 = vpop.f32.mrf.mxu0  ;;  %v1161_v61 = vpop.f32.mrf.mxu1 }
 0x162   :  { %v947_v62 = vadd.f32 %v1152_v59, %v1088_v58  ;;  %v977_v63 = vadd.f32 %v1161_v61, %v1088_v58 }
 0x163   :  { %v941_v3 = vpop.f32.mrf.mxu0  ;;  %v971_v4 = vpop.f32.mrf.mxu1 }
 0x164   :  { %v1008_v5 = vsub.f32 %v947_v62, %v1089_v60  ;;  %v1014_v6 = vsub.f32 %v977_v63, %v1089_v60  ;;  %v942_v7 = vadd.f32 %v1088_v58, %v941_v3  ;;  %v972_v8 = vadd.f32 %v1088_v58, %v971_v4 }
 0x165   :  { %v1155_v9 = vpop.f32.mrf.mxu0  ;;  %v1164_v10 = vpop.f32.mrf.mxu1 }
 0x166   :  { %1020 = vst [vmem:[%s1591_s7 + $0x8] sm:$0xff] %v1008_v5  ;;  %1026 = vst [vmem:[%s1591_s7 + $0x38] sm:$0xff] %v1014_v6  ;;  %v1007_v11 = vsub.f32 %v942_v7, %v1089_v60  ;;  %v1013_v12 = vsub.f32 %v972_v8, %v1089_v60  ;;  %v957_v13 = vadd.f32 %v1155_v9, %v1088_v58 }
 0x167   :  { %v987_v14 = vadd.f32 %v1164_v10, %v1088_v58  ;;  %v951_v15 = vpop.f32.mrf.mxu0  ;;  %v981_v16 = vpop.f32.mrf.mxu1 }
 0x168   :  { %1019 = vst [vmem:[%s1591_s7] sm:$0xff] %v1007_v11  ;;  %1025 = vst [vmem:[%s1591_s7 + $0x30] sm:$0xff] %v1013_v12  ;;  %v1010_v17 = vsub.f32 %v957_v13, %v1089_v60  ;;  %v952_v19 = vadd.f32 %v1088_v58, %v951_v15  ;;  %v982_v20 = vadd.f32 %v1088_v58, %v981_v16 }
 0x169   :  { %v1016_v18 = vsub.f32 %v987_v14, %v1089_v60  ;;  %v1158_v21 = vpop.f32.mrf.mxu0  ;;  %v1167_v22 = vpop.f32.mrf.mxu1 }
 0x16a   :  { %1022 = vst [vmem:[%s1591_s7 + $0x18] sm:$0xff] %v1010_v17  ;;  %v1009_v23 = vsub.f32 %v952_v19, %v1089_v60  ;;  %v1015_v24 = vsub.f32 %v982_v20, %v1089_v60  ;;  %v967_v25 = vadd.f32 %v1158_v21, %v1088_v58  ;;  %v997_v27 = vadd.f32 %v1167_v22, %v1088_v58 }
 0x16b   :  { %1028 = vst [vmem:[%s1591_s7 + $0x48] sm:$0xff] %v1016_v18  ;;  %v961_v28 = vpop.f32.mrf.mxu0  ;;  %v991_v29 = vpop.f32.mrf.mxu1 }
 0x16c   :  { %1021 = vst [vmem:[%s1591_s7 + $0x10] sm:$0xff] %v1009_v23  ;;  %1027 = vst [vmem:[%s1591_s7 + $0x40] sm:$0xff] %v1015_v24  ;;  %v1012_v30 = vsub.f32 %v967_v25, %v1089_v60  ;;  %v1018_v31 = vsub.f32 %v997_v27, %v1089_v60  ;;  %v962_v32 = vadd.f32 %v1088_v58, %v961_v28 }
 0x16d   :  { %v992_v33 = vadd.f32 %v1088_v58, %v991_v29 }
 0x16e   :  { %1024 = vst [vmem:[%s1591_s7 + $0x28] sm:$0xff] %v1012_v30  ;;  %1030 = vst [vmem:[%s1591_s7 + $0x58] sm:$0xff] %v1018_v31  ;;  %v1011_v34 = vsub.f32 %v962_v32, %v1089_v60 }
 0x16f   :  { %v1017_v35 = vsub.f32 %v992_v33, %v1089_v60 }
 0x170   :  { %1023 = vst [vmem:[%s1591_s7 + $0x20] sm:$0xff] %v1011_v34 }
 0x171   :  { %1029 = vst [vmem:[%s1591_s7 + $0x50] sm:$0xff] %v1017_v35 }

</bundles_post_ra>
